<compile_context>
chip_gen: v6e
topology: v6e:2x2x1
jax: 0.10.0
libtpu: 0.0.40
codegen_flags: <defaults>
</compile_context>

<pallas_src>
import math

import numpy as np
import jax
import jax.numpy as jnp
from jax import lax
from jax.experimental import pallas as pl
from jax.experimental.pallas import tpu as pltpu

EPS = 1e-5  # torch.nn.LayerNorm default


def _make_kernel(n_inputs, d_in, n_seg, eps):
    """LayerNorm over the trailing feature axis.

    If n_seg > 1, each lane-row of the tile holds n_seg logical rows of width
    d_in (lane width = n_seg * d_in = 128).  Per-row moments are computed with
    a block-diagonal 0/1 "segment ones" matmul that reduces and re-broadcasts
    in one shot; the f32 operand is split into hi/lo bf16 terms so each
    reduction is 2 bf16 MXU passes (near-f32-exact, far cheaper than the old
    6-pass HIGHEST f32 matmuls).
    """
    inv_d = 1.0 / float(d_in)
    folded = n_seg > 1

    def kernel(*refs):
        x_refs = refs[:n_inputs]
        gamma_ref = refs[n_inputs]
        beta_ref = refs[n_inputs + 1]
        if folded:
            seg_ref = refs[n_inputs + 2]
            o_ref = refs[n_inputs + 3]
        else:
            o_ref = refs[n_inputs + 2]

        # Fused list-sum (matches `if isinstance(X, list): X = sum(X)`);
        # each input is upcast from its native dtype inside the kernel.
        x = x_refs[0][...].astype(jnp.float32)
        for r in x_refs[1:]:
            x = x + r[...].astype(jnp.float32)

        if folded:
            seg = seg_ref[...]  # (L, L) bf16 block-diagonal 0/1, host-hoisted

            def seg_mean(a):
                # 2-term bf16 split of the f32 operand; RHS is exactly 0/1.
                hi = a.astype(jnp.bfloat16)
                lo = (a - hi.astype(jnp.float32)).astype(jnp.bfloat16)
                s = (jnp.dot(hi, seg, preferred_element_type=jnp.float32)
                     + jnp.dot(lo, seg, preferred_element_type=jnp.float32))
                return s * inv_d  # already broadcast across each segment's lanes

            mean = seg_mean(x)
            xc = x - mean
            var = seg_mean(xc * xc)          # two-pass variance (no cancellation)
        else:
            mean = jnp.sum(x, axis=-1, keepdims=True) * inv_d
            xc = x - mean
            var = jnp.sum(xc * xc, axis=-1, keepdims=True) * inv_d

        inv = lax.rsqrt(jnp.maximum(var, 0.0) + eps)
        # NOTE: a partial tail block may read undefined rows; anything they
        # produce (even NaN/Inf) stays confined to those rows and their
        # stores are masked out by Pallas.
        y = xc * inv * gamma_ref[...] + beta_ref[...]
        o_ref[...] = y.astype(o_ref.dtype)

    return kernel


def layernorm1d(X, gamma, beta, *, eps=EPS, block_rows=None):
    """LayerNorm over the last dim. X may be a list (summed inside the kernel)."""
    if isinstance(X, (list, tuple)):
        xs = [jnp.asarray(x) for x in X]
    else:
        xs = [jnp.asarray(X)]
    n_in = len(xs)

    orig_shape = xs[0].shape
    d_in = orig_shape[-1]
    rows = math.prod(orig_shape[:-1])

    out_dtype = jnp.result_type(*[x.dtype for x in xs])
    if not jnp.issubdtype(out_dtype, jnp.floating):
        out_dtype = jnp.float32

    # Lane-dense layout for narrow features: fold groups of rows into the
    # 128-lane axis. A ragged row count is zero-padded (pad rows normalize to
    # finite values and are sliced off) so the fold always applies.
    n_seg, pad_rows = 1, 0
    if d_in < 128 and 128 % d_in == 0:
        n_seg = 128 // d_in
        pad_rows = (-rows) % n_seg
    lane_w = n_seg * d_in
    n_rows = (rows + pad_rows) // n_seg

    xs2d = []
    for x in xs:  # native dtype preserved; the kernel upcasts to f32
        x2 = x.reshape(rows, d_in)
        if pad_rows:
            x2 = jnp.pad(x2, ((0, pad_rows), (0, 0)))
        xs2d.append(x2.reshape(n_rows, lane_w))

    in_isizes = [jnp.dtype(x.dtype).itemsize for x in xs2d]
    out_isize = jnp.dtype(out_dtype).itemsize
    sub_align = max(8, 32 // max(min(in_isizes + [out_isize]), 1))

    # VMEM-aware tile sizing: double-buffered in/out tiles plus ~5 f32
    # intermediates per element (x, xc, xc*xc, bf16 split temps, y).
    try:
        vmem_cap = int(pltpu.get_tpu_info().vmem_capacity_bytes)
    except Exception:
        vmem_cap = 64 << 20  # conservative default: v7x per-TensorCore VMEM

    bytes_per_row = lane_w * (2 * sum(in_isizes) + 2 * out_isize + 5 * 4)
    budget = int(0.45 * vmem_cap)
    per_in_cap = (8 << 20) if vmem_cap >= (100 << 20) else (3 << 20)

    if block_rows is None:
        br = min(budget // bytes_per_row, per_in_cap // (lane_w * max(in_isizes)))
    else:
        br = min(int(block_rows), max(budget // bytes_per_row, sub_align))
    br = max(br, 1)
    if br >= n_rows:
        br = n_rows                                       # single full block
    else:
        br = max(sub_align, (br // sub_align) * sub_align)

    gamma_l = jnp.tile(jnp.asarray(gamma, jnp.float32).reshape(-1), n_seg).reshape(1, lane_w)
    beta_l = jnp.tile(jnp.asarray(beta, jnp.float32).reshape(-1), n_seg).reshape(1, lane_w)

    extra_inputs = []
    in_specs = [pl.BlockSpec((br, lane_w), lambda i: (i, 0)) for _ in range(n_in)]
    in_specs += [pl.BlockSpec((1, lane_w), lambda i: (0, 0))] * 2
    if n_seg > 1:
        # Block-diagonal 0/1 segment-ones matrix, built once on the host
        # (hoisted out of the grid body), fetched once into VMEM.
        idx = np.arange(lane_w)
        seg_ones = (idx[:, None] // d_in) == (idx[None, :] // d_in)
        extra_inputs.append(jnp.asarray(seg_ones, dtype=jnp.bfloat16))
        in_specs.append(pl.BlockSpec((lane_w, lane_w), lambda i: (0, 0)))

    fixed_bytes = 2 * 2 * lane_w * 4                      # gamma/beta (dbl-buffered)
    if n_seg > 1:
        fixed_bytes += 2 * lane_w * lane_w * 2            # segment matrix (bf16)
    vmem_need = br * bytes_per_row + fixed_bytes + (1 << 20)
    vmem_limit = int(min(max(vmem_need + (16 << 20), 32 << 20), 0.62 * vmem_cap))
    vmem_limit = min(max(vmem_limit, vmem_need + (2 << 20)), vmem_cap)

    out = pl.pallas_call(
        _make_kernel(n_in, d_in, n_seg, eps),
        out_shape=jax.ShapeDtypeStruct((n_rows, lane_w), out_dtype),
        grid_spec=pltpu.PrefetchScalarGridSpec(
            num_scalar_prefetch=0,
            grid=(pl.cdiv(n_rows, br),),       # partial tail block masked by Pallas
            in_specs=in_specs,
            out_specs=pl.BlockSpec((br, lane_w), lambda i: (i, 0)),
        ),
        compiler_params=pltpu.CompilerParams(
            dimension_semantics=("parallel",),  # see TODO(synk) above re: v7x dual-TC
            vmem_limit_bytes=vmem_limit,
        ),
    )(*xs2d, gamma_l, beta_l, *extra_inputs)

    if pad_rows:
        out = out.reshape(rows + pad_rows, d_in)[:rows]
    return out.reshape(orig_shape)


if __name__ == "__main__":
    key = jax.random.PRNGKey(0)

    def ref_layernorm(X, gamma, beta, eps=EPS):
        if isinstance(X, (list, tuple)):
            X = sum([jnp.asarray(x).astype(jnp.float32) for x in X])
        x = jnp.asarray(X).astype(jnp.float32)
        mean = jnp.mean(x, axis=-1, keepdims=True)
        var = jnp.mean((x - mean) ** 2, axis=-1, keepdims=True)
        return (x - mean) / jnp.sqrt(var + eps) * gamma.astype(jnp.float32) + beta.astype(jnp.float32)

    batch, seq, d_in = 2, 8, 32
    k0, k1, k2, k3, k4 = jax.random.split(key, 5)
    x = jax.random.normal(k0, (batch, seq, d_in), dtype=jnp.float32)
    gamma = 1.0 + 0.1 * jax.random.normal(k1, (d_in,), dtype=jnp.float32)
    beta = 0.1 * jax.random.normal(k2, (d_in,), dtype=jnp.float32)

    # 1) narrow feature dim (d_in=32): lane-folded 128-wide path
    y = jax.block_until_ready(layernorm1d(x, gamma, beta))
    assert jnp.allclose(y, ref_layernorm(x, gamma, beta), atol=1e-4, rtol=1e-4), "case1 mismatch"

    # 2) list input with mixed dtypes (f32 + bf16), summed inside the kernel
    x2 = jax.random.normal(k3, (batch, seq, d_in), dtype=jnp.float32).astype(jnp.bfloat16)
    y_list = jax.block_until_ready(layernorm1d([x, x2], gamma, beta))
    assert y_list.dtype == jnp.float32
    assert jnp.allclose(y_list, ref_layernorm([x, x2], gamma, beta),
                        atol=1e-4, rtol=1e-4), "case2 mismatch"

    # 3) ragged row count (22 rows, d_in=32): host zero-pad keeps the fold lane-dense
    x3 = jax.random.normal(k1, (2, 11, d_in), dtype=jnp.float32)
    y3 = jax.block_until_ready(layernorm1d(x3, gamma, beta))
    assert jnp.allclose(y3, ref_layernorm(x3, gamma, beta), atol=1e-4, rtol=1e-4), "case3 mismatch"

    # 4) wide bf16 path (d_in=128) with a partial (masked) tail block
    d4 = 128
    g4 = 1.0 + 0.1 * jax.random.normal(k2, (d4,), dtype=jnp.float32)
    b4 = 0.1 * jax.random.normal(k3, (d4,), dtype=jnp.float32)
    x4 = jax.random.normal(k4, (4, 16, d4), dtype=jnp.float32).astype(jnp.bfloat16)
    y4 = jax.block_until_ready(layernorm1d(x4, g4, b4, block_rows=48))
    assert jnp.allclose(y4.astype(jnp.float32), ref_layernorm(x4, g4, b4),
                        atol=2e-2, rtol=2e-2), "case4 mismatch"

    # 5) wide f32 path (d_in=256), tight-precision check (no MXU involved)
    d5 = 256
    g5 = 1.0 + 0.1 * jax.random.normal(k0, (d5,), dtype=jnp.float32)
    b5 = 0.1 * jax.random.normal(k1, (d5,), dtype=jnp.float32)
    x5 = jax.random.normal(k2, (2, 8, d5), dtype=jnp.float32)
    y5 = jax.block_until_ready(layernorm1d(x5, g5, b5))
    assert jnp.allclose(y5, ref_layernorm(x5, g5, b5), atol=1e-5, rtol=1e-5), "case5 mismatch"

    print("KERNEL_OK")
</pallas_src>

<mosaic_0001>
module attributes {stable_mosaic.version = 11 : i64} {
  func.func @kernel(%arg0: i32, %arg1: memref<4x128xf32, #tpu.memory_space<vmem>>, %arg2: memref<1x128xf32, #tpu.memory_space<vmem>>, %arg3: memref<1x128xf32, #tpu.memory_space<vmem>>, %arg4: memref<128x128xbf16, #tpu.memory_space<vmem>>, %arg5: memref<4x128xf32, #tpu.memory_space<vmem>>) attributes {dimension_semantics = [#tpu.dimension_semantics<parallel>], iteration_bounds = array<i64: 1>, scalar_prefetch = 0 : i64, scratch_operands = 0 : i64, tpu.core_type = #tpu.core_type<tc>, window_params = [{transform_indices = @transform_0, window_bounds = array<i64: 4, 128>}, {pipeline_mode = #tpu.pipeline_mode<synchronous>, transform_indices = @transform_1, window_bounds = array<i64: 1, 128>}, {pipeline_mode = #tpu.pipeline_mode<synchronous>, transform_indices = @transform_2, window_bounds = array<i64: 1, 128>}, {pipeline_mode = #tpu.pipeline_mode<synchronous>, transform_indices = @transform_3, window_bounds = array<i64: 128, 128>}, {transform_indices = @transform_4, window_bounds = array<i64: 4, 128>}]} {
    %c0 = arith.constant 0 : index
    %c0_0 = arith.constant 0 : index
    %0 = vector.load %arg1[%c0, %c0_0] : memref<4x128xf32, #tpu.memory_space<vmem>>, vector<4x128xf32>
    %c0_1 = arith.constant 0 : index
    %c0_2 = arith.constant 0 : index
    %1 = vector.load %arg4[%c0_1, %c0_2] : memref<128x128xbf16, #tpu.memory_space<vmem>>, vector<128x128xbf16>
    %2 = arith.truncf %0 : vector<4x128xf32> to vector<4x128xbf16>
    %3 = arith.extf %2 : vector<4x128xbf16> to vector<4x128xf32>
    %4 = arith.subf %0, %3 : vector<4x128xf32>
    %5 = arith.truncf %4 : vector<4x128xf32> to vector<4x128xbf16>
    %cst = arith.constant dense<0.000000e+00> : vector<4x128xf32>
    %6 = tpu.matmul %2, %1, %cst {dimension_numbers = #tpu.dot_dimension_numbers<[1], [0], [0], [1], [0, 0, 1, 1], [], []>} : vector<4x128xbf16>, vector<128x128xbf16>, vector<4x128xf32> -> vector<4x128xf32>
    %cst_3 = arith.constant dense<0.000000e+00> : vector<4x128xf32>
    %7 = tpu.matmul %5, %1, %cst_3 {dimension_numbers = #tpu.dot_dimension_numbers<[1], [0], [0], [1], [0, 0, 1, 1], [], []>} : vector<4x128xbf16>, vector<128x128xbf16>, vector<4x128xf32> -> vector<4x128xf32>
    %8 = arith.addf %6, %7 : vector<4x128xf32>
    %cst_4 = arith.constant 3.125000e-02 : f32
    %9 = vector.broadcast %cst_4 : f32 to vector<4x128xf32>
    %10 = arith.mulf %8, %9 : vector<4x128xf32>
    %11 = arith.subf %0, %10 : vector<4x128xf32>
    %12 = arith.mulf %11, %11 : vector<4x128xf32>
    %13 = arith.truncf %12 : vector<4x128xf32> to vector<4x128xbf16>
    %14 = arith.extf %13 : vector<4x128xbf16> to vector<4x128xf32>
    %15 = arith.subf %12, %14 : vector<4x128xf32>
    %16 = arith.truncf %15 : vector<4x128xf32> to vector<4x128xbf16>
    %cst_5 = arith.constant dense<0.000000e+00> : vector<4x128xf32>
    %17 = tpu.matmul %13, %1, %cst_5 {dimension_numbers = #tpu.dot_dimension_numbers<[1], [0], [0], [1], [0, 0, 1, 1], [], []>} : vector<4x128xbf16>, vector<128x128xbf16>, vector<4x128xf32> -> vector<4x128xf32>
    %cst_6 = arith.constant dense<0.000000e+00> : vector<4x128xf32>
    %18 = tpu.matmul %16, %1, %cst_6 {dimension_numbers = #tpu.dot_dimension_numbers<[1], [0], [0], [1], [0, 0, 1, 1], [], []>} : vector<4x128xbf16>, vector<128x128xbf16>, vector<4x128xf32> -> vector<4x128xf32>
    %19 = arith.addf %17, %18 : vector<4x128xf32>
    %cst_7 = arith.constant 3.125000e-02 : f32
    %20 = vector.broadcast %cst_7 : f32 to vector<4x128xf32>
    %21 = arith.mulf %19, %20 : vector<4x128xf32>
    %cst_8 = arith.constant 0.000000e+00 : f32
    %22 = vector.broadcast %cst_8 : f32 to vector<4x128xf32>
    %23 = arith.maximumf %21, %22 : vector<4x128xf32>
    %cst_9 = arith.constant 9.99999974E-6 : f32
    %24 = vector.broadcast %cst_9 : f32 to vector<4x128xf32>
    %25 = arith.addf %23, %24 : vector<4x128xf32>
    %26 = math.rsqrt %25 : vector<4x128xf32>
    %27 = arith.mulf %11, %26 : vector<4x128xf32>
    %c0_10 = arith.constant 0 : index
    %c0_11 = arith.constant 0 : index
    %28 = vector.load %arg2[%c0_10, %c0_11] : memref<1x128xf32, #tpu.memory_space<vmem>>, vector<1x128xf32>
    %29 = vector.broadcast %28 : vector<1x128xf32> to vector<4x128xf32>
    %30 = arith.mulf %27, %29 : vector<4x128xf32>
    %c0_12 = arith.constant 0 : index
    %c0_13 = arith.constant 0 : index
    %31 = vector.load %arg3[%c0_12, %c0_13] : memref<1x128xf32, #tpu.memory_space<vmem>>, vector<1x128xf32>
    %32 = vector.broadcast %31 : vector<1x128xf32> to vector<4x128xf32>
    %33 = arith.addf %30, %32 : vector<4x128xf32>
    %c0_14 = arith.constant 0 : index
    %c0_15 = arith.constant 0 : index
    %34 = vector.load %arg5[%c0_14, %c0_15] : memref<4x128xf32, #tpu.memory_space<vmem>>, vector<4x128xf32>
    tpu.vector_store %arg5[%c0_14, %c0_15], %33 {strides = array<i32>} : memref<4x128xf32, #tpu.memory_space<vmem>>, vector<4x128xf32>,
    return
  }
  func.func @transform_0(%arg0: i32) -> (i32, i32) {
    %c0_i32 = arith.constant 0 : i32
    %c0_i32_0 = arith.constant 0 : i32
    return %arg0, %c0_i32 : i32, i32
  }
  func.func @transform_1(%arg0: i32) -> (i32, i32) {
    %c0_i32 = arith.constant 0 : i32
    %c0_i32_0 = arith.constant 0 : i32
    %c0_i32_1 = arith.constant 0 : i32
    return %c0_i32, %c0_i32_0 : i32, i32
  }
  func.func @transform_2(%arg0: i32) -> (i32, i32) {
    %c0_i32 = arith.constant 0 : i32
    %c0_i32_0 = arith.constant 0 : i32
    %c0_i32_1 = arith.constant 0 : i32
    return %c0_i32, %c0_i32_0 : i32, i32
  }
  func.func @transform_3(%arg0: i32) -> (i32, i32) {
    %c0_i32 = arith.constant 0 : i32
    %c0_i32_0 = arith.constant 0 : i32
    %c0_i32_1 = arith.constant 0 : i32
    return %c0_i32, %c0_i32_0 : i32, i32
  }
  func.func @transform_4(%arg0: i32) -> (i32, i32) {
    %c0_i32 = arith.constant 0 : i32
    %c0_i32_0 = arith.constant 0 : i32
    return %arg0, %c0_i32 : i32, i32
  }
}

</mosaic_0001>

<bundles_post_ra>
// kernel: tpu_custom_call.1
= control target key start
LH: loop header
LB: loop body
LE: loop exit
PB: predicated region body
PF: predicated region fallthrough
CT: control target
= control target key end

     0   :  { %9 = vsyncpa [#allocation3], 0  ;;  %s621_s0 = inlined_call_operand.hbm [shape: f32[4,128], index: 0, kind: input, shape index: {}]   ;;  %s622_s1 = inlined_call_operand.vmem [shape: f32[1,128], index: 1, kind: input, shape index: {}]   ;;  %s623_s2 = inlined_call_operand.vmem [shape: f32[1,128], index: 2, kind: input, shape index: {}]   ;;  %s624_s3 = inlined_call_operand.hbm [shape: bf16[128,128], index: 3, kind: input, shape index: {}]   ;;  %s625_s4 = inlined_call_operand.hbm [shape: f32[4,128], index: 4, kind: output, shape index: {}]  }
   0x1   :  { %10 = vsyncpa [#allocation6], 0 }
   0x2   :  { %11 = vsyncpa [#allocation4], 0  ;;  %s528_s15 = smov [#allocation2]   ;;  %s529_s17 = smov [#allocation5]  }
   0x3   :  { %s18_s16 = sshll.u32 %s528_s15, 4  ;;  %s31_s18 = sshll.u32 %s529_s17, 4  ;;  %s19_s16 = int_to_ptr.vmem [resolvable:$true] %s18_s16  ;;  %s32_s18 = int_to_ptr.vmem [resolvable:$true] %s31_s18 }
   0x4   :  { %s470_s19 = scalar_lea.vmem %s19_s16, 64  ;;  %p475_p1 = scmp.lt.s32.totalorder %s19_s16, %s19_s16 }
   0x5   :  { %p471_p0 = scmp.ne.s32.totalorder %s19_s16, %s470_s19  ;;  %p476_p2 = scmp.lt.s32.totalorder %s470_s19, %s470_s19 }
   0x7   :  { %p477_p3 = por %p476_p2, %p475_p1 }
   0x9   :  { %p478_p4 = pnand %p477_p3, %p471_p0 }
   0xb   :  { %481 = shalt.err (!%p478_p4)
}
   0xc   :  { %21 = dma.hbm_to_vmem [thread:$0]  %s621_s0, 64, %s19_s16, [#allocation3]  }
   0xd   :  { %s490_s22 = scalar_lea.vmem %s32_s18, 1024  ;;  %p495_p6 = scmp.lt.s32.totalorder %s32_s18, %s32_s18 }
   0xe   :  { %p491_p5 = scmp.ne.s32.totalorder %s32_s18, %s490_s22  ;;  %p496_p7 = scmp.lt.s32.totalorder %s490_s22, %s490_s22 }
  0x10   :  { %p497_p8 = por %p496_p7, %p495_p6 }
  0x12   :  { %p498_p9 = pnand %p497_p8, %p491_p5 }
  0x14   :  { %501 = shalt.err (!%p498_p9)
}
  0x15   :  { %s530_s23 = smov 64   ;;  %s531_s24 = smov 4  }
  0x16   :  { %37 = dma.hbm_to_vmem [thread:$0]  %s624_s3, 1024, %s32_s18, [#allocation6], %s530_s23, %s530_s23, %s531_s24  }
  0x17   :  { %522 = dma.done.wait [#allocation3], 64  }
  0x18   :  { %523 = vsyncadd [#allocation3], 4294967232 }
  0x19   :  { %524 = dma.done.wait [#allocation6], 1024  }
  0x1a   :  { %525 = vsyncadd [#allocation6], 4294966272  ;;  %v532_v0 = vmov 0.0   ;;  %vm533_vm0 = vmmov 0   ;;  %v452_v1 = vld [vmem:[#allocation5 + $0x38] sm:$0xff]   ;;  %v453_v2 = vld [vmem:[#allocation5 + $0x30] sm:$0xff]  }
  0x1b   :  { %365 = vmatprep.subr.bf16.mxu0 %v532_v0  ;;  %385 = vmatprep.subr.bf16.mxu1 %v532_v0  ;;  %v454_v3 = vld [vmem:[#allocation5 + $0x28] sm:$0xff]   ;;  %v455_v4 = vld [vmem:[#allocation5 + $0x20] sm:$0xff]   ;;  %v456_v5 = vld [vmem:[#allocation5 + $0x18] sm:$0xff]   ;;  %s534_s29 = smov [#allocation7]  }
  0x1c   :  { %381 = vmatprep.mubr.msk.bf16.mxu0 %vm533_vm0, %v532_v0  ;;  %401 = vmatprep.mubr.msk.bf16.mxu1 %vm533_vm0, %v532_v0  ;;  %v578_v6 = vld [vmem:[#allocation2] sm:$0xf]  ;;  %v457_v8 = vld [vmem:[#allocation5 + $0x10] sm:$0xff]   ;;  %v458_v10 = vld [vmem:[#allocation5 + $0x8] sm:$0xff]   ;;  %s309_s30 = sshll.u32 %s534_s29, 4  ;;  %s310_s30 = int_to_ptr.vmem [resolvable:$true] %s309_s30 }
  0x1d   :  { %366 = vmatpush3.bf16.msra.mxu0 %v452_v1  ;;  %386 = vmatpush3.bf16.msra.mxu1 %v452_v1  ;;  %v62_v7 = vpack.c.bf16 %v578_v6, %v578_v6  ;;  %v459_v12 = vld [vmem:[#allocation5] sm:$0xff]   ;;  %v327_v43 = vld [vmem:[%s622_s1] ss:$0 sm:$0xff]  ;;  %s502_s5 = scalar_lea.vmem %s310_s30, 64  ;;  %p507_p11 = scmp.lt.s32.totalorder %s310_s30, %s310_s30 }
  0x1e   :  { %367 = vmatprep.subr.bf16.mxu0 %v532_v0  ;;  %387 = vmatprep.subr.bf16.mxu1 %v532_v0  ;;  %v328_v45 = vld [vmem:[%s623_s2] ss:$0 sm:$0xff]  ;;  %p503_p10 = scmp.ne.s32.totalorder %s310_s30, %s502_s5  ;;  %p508_p12 = scmp.lt.s32.totalorder %s502_s5, %s502_s5 }
  0x1f   :  { %v63_v9 = vunpack.c.l.bf16 %v62_v7 }
  0x20   :  { %p509_p13 = por %p508_p12, %p507_p11 }
  0x21   :  { %368 = vmatpush3.bf16.msra.mxu0 %v453_v2  ;;  %388 = vmatpush3.bf16.msra.mxu1 %v453_v2  ;;  %v64_v11 = vsub.f32 %v578_v6, %v63_v9 }
  0x22   :  { %369 = vmatprep.subr.bf16.mxu0 %v532_v0  ;;  %389 = vmatprep.subr.bf16.mxu1 %v532_v0  ;;  %p510_p0 = pnand %p509_p13, %p503_p10 }
  0x23   :  { %v65_v13 = vpack.c.bf16 %v64_v11, %v64_v11 }
  0x25   :  { %370 = vmatpush3.bf16.msra.mxu0 %v454_v3  ;;  %390 = vmatpush3.bf16.msra.mxu1 %v454_v3 }
  0x26   :  { %371 = vmatprep.subr.bf16.mxu0 %v532_v0  ;;  %391 = vmatprep.subr.bf16.mxu1 %v532_v0 }
  0x29   :  { %372 = vmatpush3.bf16.msra.mxu0 %v455_v4  ;;  %392 = vmatpush3.bf16.msra.mxu1 %v455_v4 }
  0x2a   :  { %373 = vmatprep.subr.bf16.mxu0 %v532_v0  ;;  %393 = vmatprep.subr.bf16.mxu1 %v532_v0 }
  0x2d   :  { %374 = vmatpush3.bf16.msra.mxu0 %v456_v5  ;;  %394 = vmatpush3.bf16.msra.mxu1 %v456_v5 }
  0x2e   :  { %375 = vmatprep.subr.bf16.mxu0 %v532_v0  ;;  %395 = vmatprep.subr.bf16.mxu1 %v532_v0 }
  0x31   :  { %376 = vmatpush3.bf16.msra.mxu0 %v457_v8  ;;  %396 = vmatpush3.bf16.msra.mxu1 %v457_v8 }
  0x32   :  { %377 = vmatprep.subr.bf16.mxu0 %v532_v0  ;;  %397 = vmatprep.subr.bf16.mxu1 %v532_v0 }
  0x35   :  { %378 = vmatpush3.bf16.msra.mxu0 %v458_v10  ;;  %398 = vmatpush3.bf16.msra.mxu1 %v458_v10 }
  0x36   :  { %379 = vmatprep.subr.bf16.mxu0 %v532_v0  ;;  %399 = vmatprep.subr.bf16.mxu1 %v532_v0 }
  0x39   :  { %380 = vmatpush3.bf16.msra.mxu0 %v459_v12  ;;  %400 = vmatpush3.bf16.msra.mxu1 %v459_v12 }
  0x3a   :  { %425 = vmatprep.subr.bf16.mxu1 %v532_v0  ;;  %405 = vmatprep.subr.bf16.mxu0 %v532_v0 }
  0x3c   :  { %382 = vmatmul.mubr.bf16.vlgmr.msra.gmra.mxu0 %v65_v13  ;;  %402 = vmatmul.mubr.bf16.vlgmr.msra.gmra.mxu1 %v62_v7 }
  0x3d   :  { %426 = vmatpush3.bf16.msra.mxu1 %v452_v1  ;;  %406 = vmatpush3.bf16.msra.mxu0 %v452_v1 }
  0x3e   :  { %427 = vmatprep.subr.bf16.mxu1 %v532_v0  ;;  %407 = vmatprep.subr.bf16.mxu0 %v532_v0 }
  0x3f   :  { %441 = vmatprep.mubr.msk.bf16.mxu1 %vm533_vm0, %v532_v0  ;;  %421 = vmatprep.mubr.msk.bf16.mxu0 %vm533_vm0, %v532_v0 }
  0x41   :  { %428 = vmatpush3.bf16.msra.mxu1 %v453_v2  ;;  %408 = vmatpush3.bf16.msra.mxu0 %v453_v2 }
  0x42   :  { %429 = vmatprep.subr.bf16.mxu1 %v532_v0  ;;  %409 = vmatprep.subr.bf16.mxu0 %v532_v0 }
  0x45   :  { %430 = vmatpush3.bf16.msra.mxu1 %v454_v3  ;;  %410 = vmatpush3.bf16.msra.mxu0 %v454_v3 }
  0x46   :  { %431 = vmatprep.subr.bf16.mxu1 %v532_v0  ;;  %411 = vmatprep.subr.bf16.mxu0 %v532_v0 }
  0x49   :  { %432 = vmatpush3.bf16.msra.mxu1 %v455_v4  ;;  %412 = vmatpush3.bf16.msra.mxu0 %v455_v4 }
  0x4a   :  { %433 = vmatprep.subr.bf16.mxu1 %v532_v0  ;;  %413 = vmatprep.subr.bf16.mxu0 %v532_v0 }
  0x4d   :  { %434 = vmatpush3.bf16.msra.mxu1 %v456_v5  ;;  %414 = vmatpush3.bf16.msra.mxu0 %v456_v5 }
  0x4e   :  { %435 = vmatprep.subr.bf16.mxu1 %v532_v0  ;;  %415 = vmatprep.subr.bf16.mxu0 %v532_v0 }
  0x51   :  { %436 = vmatpush3.bf16.msra.mxu1 %v457_v8  ;;  %416 = vmatpush3.bf16.msra.mxu0 %v457_v8 }
  0x52   :  { %437 = vmatprep.subr.bf16.mxu1 %v532_v0  ;;  %417 = vmatprep.subr.bf16.mxu0 %v532_v0 }
  0x55   :  { %438 = vmatpush3.bf16.msra.mxu1 %v458_v10  ;;  %418 = vmatpush3.bf16.msra.mxu0 %v458_v10 }
  0x56   :  { %439 = vmatprep.subr.bf16.mxu1 %v532_v0  ;;  %419 = vmatprep.subr.bf16.mxu0 %v532_v0 }
  0x59   :  { %440 = vmatpush3.bf16.msra.mxu1 %v459_v12  ;;  %420 = vmatpush3.bf16.msra.mxu0 %v459_v12 }
  0xfc   :  { %v148_v14 = vpop.f32.mrf.mxu0  ;;  %v188_v15 = vpop.f32.mrf.mxu1 }
  0xfd   :  { %v189_v16 = vadd.f32 %v188_v15, %v148_v14 }
  0xfe   :  { %v383_v17 = vpop.f32.mrf.mxu0  ;;  %v403_v18 = vpop.f32.mrf.mxu1 }
  0xff   :  { %v194_v19 = vmul.f32 0.03125, %v189_v16 }
 0x100   :  { %v151_v20 = vpop.f32.mrf.mxu0  ;;  %v191_v21 = vpop.f32.mrf.mxu1 }
 0x101   :  { %v195_v22 = vsub.f32 %v578_v6, %v194_v19 }
 0x102   :  { %v384_v23 = vpop.f32.mrf.mxu0  ;;  %v404_v24 = vpop.f32.mrf.mxu1 }
 0x103   :  { %v196_v25 = vmul.f32 %v195_v22, %v195_v22 }
 0x105   :  { %v197_v26 = vpack.c.bf16 %v196_v25, %v196_v25 }
 0x107   :  { %v198_v27 = vunpack.c.l.bf16 %v197_v26  ;;  %442 = vmatmul.mubr.bf16.vlgmr.msra.gmra.mxu1 %v197_v26 }
 0x109   :  { %v199_v28 = vsub.f32 %v196_v25, %v198_v27 }
 0x10b   :  { %v200_v29 = vpack.c.bf16 %v199_v28, %v199_v28 }
 0x10d   :  { %422 = vmatmul.mubr.bf16.vlgmr.msra.gmra.mxu0 %v200_v29 }
 0x1c7   :  { %v275_v30 = vpop.f32.mrf.mxu1 }
 0x1c9   :  { %v443_v31 = vpop.f32.mrf.mxu1 }
 0x1cb   :  { %v278_v32 = vpop.f32.mrf.mxu1 }
 0x1cd   :  { %v235_v33 = vpop.f32.mrf.mxu0  ;;  %v444_v34 = vpop.f32.mrf.mxu1 }
 0x1ce   :  { %v276_v35 = vadd.f32 %v275_v30, %v235_v33 }
 0x1cf   :  { %v423_v36 = vpop.f32.mrf.mxu0 }
 0x1d0   :  { %v281_v37 = vmul.f32 0.03125, %v276_v35 }
 0x1d1   :  { %v238_v38 = vpop.f32.mrf.mxu0 }
 0x1d2   :  { %v282_v39 = vmax.f32 %v281_v37, 0.0 }
 0x1d3   :  { %v424_v40 = vpop.f32.mrf.mxu0 }
 0x1d4   :  { %v283_v41 = vadd.f32 1e-05, %v282_v39 }
 0x1d6   :  { %460 = vrsqrt.f32 %v283_v41 }
 0x1e3   :  { %v461_v42 = vpop.eup %460 }
 0x1e4   :  { %v285_v44 = vmul.f32 %v461_v42, %v195_v22 }
 0x1e6   :  { %v293_v46 = vmul.f32 %v327_v43, %v285_v44 }
 0x1e8   :  { %v301_v47 = vadd.f32 %v328_v45, %v293_v46 }
 0x1ea   :  { %302 = vst [vmem:[#allocation7] sm:$0xf] %v301_v47 }
 0x1eb   :  { %513 = shalt.err (!%p510_p0)
}
 0x1ec   :  { %312 = dma.vmem_to_hbm [thread:$0]  %s310_s30, 64, %s625_s4, [#allocation4]  }
 0x1ed   :  { %526 = dma.done.wait [#allocation4], 64  }
 0x1ee   :  { %527 = vsyncadd [#allocation4], 4294967232 }
 0x1ef   :  { %316 = vsyncpa [#allocation3], 1 }
 0x1f0   :  { %317 = vsyncpa [#allocation6], 1 }
 0x1f1   :  { %318 = vsyncpa [#allocation4], 1 }

</bundles_post_ra>
